<compile_context>
chip_gen: v7x
topology: tpu7x:2x2x1
jax: 0.10.0
libtpu: 0.0.40
codegen_flags: <defaults>
</compile_context>

<pallas_src>
import jax
import jax.numpy as jnp
from jax import lax
from jax.experimental import pallas as pl
from jax.experimental.pallas import tpu as pltpu

_LANE = 128  # lane granularity for time-axis tiling


def _conv_tail(left, cur, right, wf_ref, bd_ref, w1_ref, b1_ref, o_ref):
    """Fused k=3 conv matmul -> bias -> ReLU -> 1x1 matmul -> residual add."""
    # xcat rows: [0:C) = x[:, t-d], [C:2C) = x[:, t], [2C:3C) = x[:, t+d]
    xcat = jnp.concatenate([left, cur, right], axis=0)                  # (3C, TT)
    h = jnp.dot(wf_ref[...], xcat, preferred_element_type=jnp.float32)  # (Cout, TT)
    h = jnp.maximum(h + bd_ref[...], 0.0)                               # bias + ReLU
    y = jnp.dot(w1_ref[...], h, preferred_element_type=jnp.float32) + b1_ref[...]
    # TODO(synk): Dropout is identity in inference/eval mode; training-mode
    # stochastic masking is intentionally omitted.
    o_ref[0] = (cur + y).astype(o_ref.dtype)                            # residual


def _make_single_tile_kernel(T, C, d):
    """Whole time axis in one block (small T): halos are plain zero columns."""
    dd = min(d, T)

    def kernel(x_ref, wf_ref, bd_ref, w1_ref, b1_ref, o_ref):
        cur = x_ref[0]                                                  # (C, T)
        if dd >= T:
            # dilation >= T: both shifted taps fall entirely in the zero padding.
            left = jnp.zeros_like(cur)
            right = jnp.zeros_like(cur)
        else:
            zeros = jnp.zeros((C, dd), dtype=cur.dtype)
            left = jnp.concatenate([zeros, cur[:, :T - dd]], axis=1)    # x[:, t-d]
            right = jnp.concatenate([cur[:, dd:], zeros], axis=1)       # x[:, t+d]
        _conv_tail(left, cur, right, wf_ref, bd_ref, w1_ref, b1_ref, o_ref)

    return kernel


def _make_tiled_kernel(T, TT, TH, C, d):
    """Time-tiled kernel: halo columns come from clamped neighbor TH-blocks."""

    def kernel(x_ref, lh_ref, rh_ref, wf_ref, bd_ref, w1_ref, b1_ref, o_ref):
        j = pl.program_id(1)
        t0 = j * TT
        cur = x_ref[0]                      # (C, TT)  cols [t0, t0+TT)
        lh = lh_ref[0]                      # (C, TH)  cols [t0-TH, t0)     (clamped at j==0)
        rh = rh_ref[0]                      # (C, TH)  cols [t0+TT, +TH)    (clamped at the end)
        t = lax.broadcasted_iota(jnp.int32, (1, TT), 1)

        # x[:, t0 + t - d]; zero where t0 + t - d < 0 (only tile 0, first d lanes).
        left = jnp.concatenate([lh[:, TH - d:], cur[:, :TT - d]], axis=1)
        left = jnp.where(jnp.logical_or(t >= d, j > 0), left, 0.0)
        # x[:, t0 + t + d]; zero where t0 + t + d >= T (right edge / partial tile).
        right = jnp.concatenate([cur[:, d:], rh[:, :d]], axis=1)
        right = jnp.where(t0 + t + d < T, right, 0.0)

        _conv_tail(left, cur, right, wf_ref, bd_ref, w1_ref, b1_ref, o_ref)

    return kernel


def dilated_residual_layer(x_nct, w_dil_oik, b_dil, w_1x1_oik, b_1x1, dilation,
                           time_tile=1024):
    """Forward pass of DilatedResidualLayer.

    x_nct:      (N, C, T)  input, PyTorch NCT layout
    w_dil_oik:  (C, C, 3)  conv_dilated weight (out, in, k)
    b_dil:      (C,)       conv_dilated bias
    w_1x1_oik:  (C, C, 1)  conv_1x1 weight
    b_1x1:      (C,)       conv_1x1 bias
    """
    N, Cin, T = x_nct.shape
    Cout = w_dil_oik.shape[0]
    assert Cin == Cout, "residual add requires in_channels == out_channels"
    C = Cin
    d = int(dilation)

    # Fused dilated-conv weight: column k*C + i multiplies x[i, t + (k-1)*d].
    wf = jnp.transpose(w_dil_oik, (0, 2, 1)).reshape(Cout, 3 * C)   # (Cout, 3C)
    w1 = w_1x1_oik[:, :, 0]                                         # (Cout, Cout)
    bd = b_dil.reshape(Cout, 1)
    b1 = b_1x1.reshape(Cout, 1)

    # Halo block (>= dilation) and time tile, both lane-aligned (multiples of 128).
    TH = max(_LANE, -(-d // _LANE) * _LANE)
    TT = max(TH, -(-int(time_tile) // TH) * TH)
    if TT <= d:
        TT += TH                       # keep the center block wider than the shift

    if TT >= T or TH >= T:
        # ---- single time tile per batch element ----
        kernel = _make_single_tile_kernel(T, C, d)
        return pl.pallas_call(
            kernel,
            out_shape=jax.ShapeDtypeStruct((N, Cout, T), x_nct.dtype),
            grid=(N,),
            in_specs=[
                pl.BlockSpec((1, C, T), lambda b: (b, 0, 0)),        # x
                pl.BlockSpec((Cout, 3 * C), lambda b: (0, 0)),       # fused dil. conv W
                pl.BlockSpec((Cout, 1), lambda b: (0, 0)),           # dil. conv bias
                pl.BlockSpec((Cout, Cout), lambda b: (0, 0)),        # 1x1 conv W
                pl.BlockSpec((Cout, 1), lambda b: (0, 0)),           # 1x1 conv bias
            ],
            out_specs=pl.BlockSpec((1, Cout, T), lambda b: (b, 0, 0)),
            compiler_params=pltpu.CompilerParams(
                dimension_semantics=("parallel",)),
        )(x_nct, wf, bd, w1, b1)

    # ---- tiled time axis ----
    nT = pl.cdiv(T, TT)                # time tiles (last may be partial -> masked store)
    nTH = pl.cdiv(T, TH)               # halo-granularity blocks over T
    R = TT // TH
    kernel = _make_tiled_kernel(T, TT, TH, C, d)
    return pl.pallas_call(
        kernel,
        out_shape=jax.ShapeDtypeStruct((N, Cout, T), x_nct.dtype),
        grid=(N, nT),
        in_specs=[
            pl.BlockSpec((1, C, TT), lambda b, j: (b, 0, j)),                            # current tile
            pl.BlockSpec((1, C, TH), lambda b, j: (b, 0, jnp.maximum(j * R - 1, 0))),    # left halo block
            pl.BlockSpec((1, C, TH), lambda b, j: (b, 0, jnp.minimum((j + 1) * R, nTH - 1))),  # right halo block
            pl.BlockSpec((Cout, 3 * C), lambda b, j: (0, 0)),                            # fused dil. conv W
            pl.BlockSpec((Cout, 1), lambda b, j: (0, 0)),                                # dil. conv bias
            pl.BlockSpec((Cout, Cout), lambda b, j: (0, 0)),                             # 1x1 conv W
            pl.BlockSpec((Cout, 1), lambda b, j: (0, 0)),                                # 1x1 conv bias
        ],
        out_specs=pl.BlockSpec((1, Cout, TT), lambda b, j: (b, 0, j)),
        compiler_params=pltpu.CompilerParams(
            dimension_semantics=("parallel", "parallel")),
    )(x_nct, x_nct, x_nct, wf, bd, w1, b1)


def _reference(x, w_dil, b_dil, w_1x1, b_1x1, d):
    """Pure-JAX reference (lax conv) matching the PyTorch module semantics."""
    conv = lax.conv_general_dilated(
        x, w_dil, window_strides=(1,), padding=[(d, d)], rhs_dilation=(d,),
        dimension_numbers=("NCH", "OIH", "NCH"))
    conv = jax.nn.relu(conv + b_dil[None, :, None])
    conv2 = lax.conv_general_dilated(
        conv, w_1x1, window_strides=(1,), padding=[(0, 0)],
        dimension_numbers=("NCH", "OIH", "NCH"))
    return x + conv2 + b_1x1[None, :, None]


if __name__ == "__main__":
    cases = [
        # (N, C, T, dilation, time_tile)  time_tile=None -> default (single tile here)
        (2, 4, 16, 2, None),     # small demo shape, single time tile
        (2, 8, 300, 2, 128),     # tiled time axis: 3 tiles, partial last tile, halos
        (2, 8, 256, 4, 128),     # tiled, T an exact multiple of the tile
        (1, 4, 300, 16, 128),    # larger dilation reaching across tile boundaries
    ]
    key = jax.random.PRNGKey(0)
    for (N, C, T, d, tt) in cases:
        key, k1, k2, k3, k4, k5 = jax.random.split(key, 6)
        x = jax.random.normal(k1, (N, C, T), jnp.float32)
        w_dil = 0.1 * jax.random.normal(k2, (C, C, 3), jnp.float32)
        b_dil = 0.1 * jax.random.normal(k3, (C,), jnp.float32)
        w_1x1 = 0.1 * jax.random.normal(k4, (C, C, 1), jnp.float32)
        b_1x1 = 0.1 * jax.random.normal(k5, (C,), jnp.float32)

        kwargs = {} if tt is None else {"time_tile": tt}
        out = dilated_residual_layer(x, w_dil, b_dil, w_1x1, b_1x1, d, **kwargs)
        out = jax.block_until_ready(out)

        ref = _reference(x, w_dil, b_dil, w_1x1, b_1x1, d)
        assert out.shape == ref.shape
        assert jnp.allclose(out, ref, atol=1e-4, rtol=1e-4), (
            f"mismatch vs reference for case N={N} C={C} T={T} d={d} tile={tt}")
    print("KERNEL_OK")
</pallas_src>

<mosaic_0001>
module attributes {stable_mosaic.version = 11 : i64} {
  func.func @kernel(%arg0: i32, %arg1: memref<1x4x16xf32, #tpu.memory_space<vmem>>, %arg2: memref<4x12xf32, #tpu.memory_space<vmem>>, %arg3: memref<4x1xf32, #tpu.memory_space<vmem>>, %arg4: memref<4x4xf32, #tpu.memory_space<vmem>>, %arg5: memref<4x1xf32, #tpu.memory_space<vmem>>, %arg6: memref<1x4x16xf32, #tpu.memory_space<vmem>>) attributes {dimension_semantics = [#tpu.dimension_semantics<parallel>], iteration_bounds = array<i64: 2>, scalar_prefetch = 0 : i64, scratch_operands = 0 : i64, tpu.core_type = #tpu.core_type<tc>, window_params = [{transform_indices = @transform_0, window_bounds = array<i64: 1, 4, 16>}, {pipeline_mode = #tpu.pipeline_mode<synchronous>, transform_indices = @transform_1, window_bounds = array<i64: 4, 12>}, {pipeline_mode = #tpu.pipeline_mode<synchronous>, transform_indices = @transform_2, window_bounds = array<i64: 4, 1>}, {pipeline_mode = #tpu.pipeline_mode<synchronous>, transform_indices = @transform_3, window_bounds = array<i64: 4, 4>}, {pipeline_mode = #tpu.pipeline_mode<synchronous>, transform_indices = @transform_4, window_bounds = array<i64: 4, 1>}, {transform_indices = @transform_5, window_bounds = array<i64: 1, 4, 16>}]} {
    %c0 = arith.constant 0 : index
    %c0_0 = arith.constant 0 : index
    %c0_1 = arith.constant 0 : index
    %0 = vector.load %arg1[%c0, %c0_0, %c0_1] : memref<1x4x16xf32, #tpu.memory_space<vmem>>, vector<1x4x16xf32>
    %1 = vector.shape_cast %0 : vector<1x4x16xf32> to vector<4x16xf32>
    %cst = arith.constant 0.000000e+00 : f32
    %2 = vector.broadcast %cst : f32 to vector<4x2xf32>
    %3 = vector.extract_strided_slice %1 {offsets = [0, 0], sizes = [4, 14], strides = [1, 1]} : vector<4x16xf32> to vector<4x14xf32>
    %4 = tpu.concatenate %2, %3 in 1 : vector<4x2xf32>, vector<4x14xf32> -> vector<4x16xf32>
    %5 = vector.extract_strided_slice %1 {offsets = [0, 2], sizes = [4, 14], strides = [1, 1]} : vector<4x16xf32> to vector<4x14xf32>
    %6 = tpu.concatenate %5, %2 in 1 : vector<4x14xf32>, vector<4x2xf32> -> vector<4x16xf32>
    %7 = tpu.concatenate %4, %1, %6 in 0 : vector<4x16xf32>, vector<4x16xf32>, vector<4x16xf32> -> vector<12x16xf32>
    %c0_2 = arith.constant 0 : index
    %c0_3 = arith.constant 0 : index
    %8 = vector.load %arg2[%c0_2, %c0_3] : memref<4x12xf32, #tpu.memory_space<vmem>>, vector<4x12xf32>
    %cst_4 = arith.constant dense<0.000000e+00> : vector<4x16xf32>
    %9 = tpu.matmul %8, %7, %cst_4 {dimension_numbers = #tpu.dot_dimension_numbers<[1], [0], [0], [1], [0, 0, 1, 1], [], []>} : vector<4x12xf32>, vector<12x16xf32>, vector<4x16xf32> -> vector<4x16xf32>
    %c0_5 = arith.constant 0 : index
    %c0_6 = arith.constant 0 : index
    %10 = vector.load %arg3[%c0_5, %c0_6] : memref<4x1xf32, #tpu.memory_space<vmem>>, vector<4x1xf32>
    %11 = vector.broadcast %10 : vector<4x1xf32> to vector<4x16xf32>
    %12 = arith.addf %9, %11 : vector<4x16xf32>
    %cst_7 = arith.constant 0.000000e+00 : f32
    %13 = vector.broadcast %cst_7 : f32 to vector<4x16xf32>
    %14 = arith.maximumf %12, %13 : vector<4x16xf32>
    %c0_8 = arith.constant 0 : index
    %c0_9 = arith.constant 0 : index
    %15 = vector.load %arg4[%c0_8, %c0_9] : memref<4x4xf32, #tpu.memory_space<vmem>>, vector<4x4xf32>
    %cst_10 = arith.constant dense<0.000000e+00> : vector<4x16xf32>
    %16 = tpu.matmul %15, %14, %cst_10 {dimension_numbers = #tpu.dot_dimension_numbers<[1], [0], [0], [1], [0, 0, 1, 1], [], []>} : vector<4x4xf32>, vector<4x16xf32>, vector<4x16xf32> -> vector<4x16xf32>
    %c0_11 = arith.constant 0 : index
    %c0_12 = arith.constant 0 : index
    %17 = vector.load %arg5[%c0_11, %c0_12] : memref<4x1xf32, #tpu.memory_space<vmem>>, vector<4x1xf32>
    %18 = vector.broadcast %17 : vector<4x1xf32> to vector<4x16xf32>
    %19 = arith.addf %16, %18 : vector<4x16xf32>
    %20 = arith.addf %1, %19 : vector<4x16xf32>
    %c0_13 = arith.constant 0 : index
    %c0_14 = arith.constant 0 : index
    %c0_15 = arith.constant 0 : index
    %21 = vector.load %arg6[%c0_13, %c0_14, %c0_15] : memref<1x4x16xf32, #tpu.memory_space<vmem>>, vector<1x4x16xf32>
    %22 = vector.shape_cast %21 : vector<1x4x16xf32> to vector<4x16xf32>
    %23 = vector.shape_cast %20 : vector<4x16xf32> to vector<1x4x16xf32>
    tpu.vector_store %arg6[%c0_13, %c0_14, %c0_15], %23 {strides = array<i32>} : memref<1x4x16xf32, #tpu.memory_space<vmem>>, vector<1x4x16xf32>,
    return
  }
  func.func @transform_0(%arg0: i32) -> (i32, i32, i32) {
    %c0_i32 = arith.constant 0 : i32
    %c0_i32_0 = arith.constant 0 : i32
    %c0_i32_1 = arith.constant 0 : i32
    return %arg0, %c0_i32, %c0_i32_0 : i32, i32, i32
  }
  func.func @transform_1(%arg0: i32) -> (i32, i32) {
    %c0_i32 = arith.constant 0 : i32
    %c0_i32_0 = arith.constant 0 : i32
    %c0_i32_1 = arith.constant 0 : i32
    return %c0_i32, %c0_i32_0 : i32, i32
  }
  func.func @transform_2(%arg0: i32) -> (i32, i32) {
    %c0_i32 = arith.constant 0 : i32
    %c0_i32_0 = arith.constant 0 : i32
    %c0_i32_1 = arith.constant 0 : i32
    return %c0_i32, %c0_i32_0 : i32, i32
  }
  func.func @transform_3(%arg0: i32) -> (i32, i32) {
    %c0_i32 = arith.constant 0 : i32
    %c0_i32_0 = arith.constant 0 : i32
    %c0_i32_1 = arith.constant 0 : i32
    return %c0_i32, %c0_i32_0 : i32, i32
  }
  func.func @transform_4(%arg0: i32) -> (i32, i32) {
    %c0_i32 = arith.constant 0 : i32
    %c0_i32_0 = arith.constant 0 : i32
    %c0_i32_1 = arith.constant 0 : i32
    return %c0_i32, %c0_i32_0 : i32, i32
  }
  func.func @transform_5(%arg0: i32) -> (i32, i32, i32) {
    %c0_i32 = arith.constant 0 : i32
    %c0_i32_0 = arith.constant 0 : i32
    %c0_i32_1 = arith.constant 0 : i32
    return %arg0, %c0_i32, %c0_i32_0 : i32, i32, i32
  }
}

</mosaic_0001>

<bundles_post_ra>
// kernel: tpu_custom_call.1
= control target key start
LH: loop header
LB: loop body
LE: loop exit
PB: predicated region body
PF: predicated region fallthrough
CT: control target
= control target key end

     0   :  { %10 = vsyncpa [#allocation3], 0  ;;  %s781_s0 = inlined_call_operand.vmem [shape: f32[2,4,16], index: 0, kind: input, shape index: {}]   ;;  %s782_s1 = inlined_call_operand.vmem [shape: f32[4,12], index: 1, kind: input, shape index: {}]   ;;  %s783_s2 = inlined_call_operand.vmem [shape: f32[4,1], index: 2, kind: input, shape index: {}]   ;;  %s784_s3 = inlined_call_operand.vmem [shape: f32[4,4], index: 3, kind: input, shape index: {}]   ;;  %s785_s4 = inlined_call_operand.vmem [shape: f32[4,1], index: 4, kind: input, shape index: {}]   ;;  %s786_s5 = inlined_call_operand.hbm [shape: f32[2,4,16], index: 5, kind: output, shape index: {}]  }
   0x1   :  { %12 = vsyncpa [#allocation3 + $0x1], 0  ;;  %s666_s18 = smov 0   ;;  %s668_s19 = smov 0  }
   0x2   :  { %s670_s20 = smov 0   ;;  %s672_s21 = smov 0  }
   0x3 LB: > { %s687_s22 = sadd.s32 4294967295, %s626_s21   ;;  %s481_s23 = sadd.s32 4294967294, %s626_s21   ;;  %s626_s21 = sphi %s672_s21, %s792_s21   ;;  %s622_s20 = sphi %s670_s20, %s791_s20   ;;  %s618_s19 = sphi %s668_s19, %s790_s19   ;;  %s614_s18 = sphi %s666_s18, %s789_s18  }
   0x4   : > { %s691_s24 = sadd.s32 1, %s626_s21   ;;  %s135_s25 = sadd.s32 1, %s622_s20 }
   0x5   : > { %s132_s26 = ssub.s32 %s626_s21, %s691_s24  ;;  %p145_p0 = scmp.ne.s32.totalorder %s622_s20, %s618_s19 }
   0x6   : > { %p133_p1 = scmp.eq.s32.totalorder %s132_s26, 0  ;;  %p146_p2 = scmp.eq.s32.totalorder %s687_s22, 1 }
   0x7   : > { %p151_p3 = scmp.ne.s32.totalorder %s618_s19, %s614_s18  ;;  %p152_p4 = scmp.eq.s32.totalorder %s481_s23, 1 }
   0x8   : > { %s702_s27 = scalar_select %p133_p1, %s622_s20, %s135_s25  }
   0x9   : > { %p704_p5 = por %p146_p2, %p145_p0  ;;  %p708_p6 = por %p152_p4, %p151_p3 }
   0xa   : > { %p484_p7 = scmp.ge.s32.totalorder %s626_s21, 1  ;;  %p189_p8 = scmp.lt.s32.totalorder %s626_s21, 3 }
   0xc   : > { %p190_p9 = pnand %p484_p7, %p189_p8 }
   0xd   : > { %p216_p10 = scmp.lt.s32.totalorder (!%p190_p9), %s687_s22, 1  ;;  %v628_v0 = vmov (!%p190_p9), 0.0|0.0   ;;  %vm629_vm0 = vmmov (!%p190_p9), 0   ;;  %v630_v1 = vmov (!%p190_p9), 0.0   ;;  %v237_v2 = vld [vmem:[%s783_s2] sm:$0xf] (!%p190_p9) }
   0xe   : > { %193 = sbr.rel (%p190_p9) target bundleno = 598 (0x256), region = 40  ;;  %512 = vmatprep.subr.bf16.mxu0 (!%p190_p9), %v628_v0  ;;  %504 = vmatprep.mubr.msk.f32.mxu0 (!%p190_p9), %vm629_vm0, %v630_v1  ;;  %v631_v3 = vmov (!%p190_p9), 0   ;;  %s632_s12 = smov (!%p190_p9), 2   ;;  %v322_v5 = vld [vmem:[%s785_s4] sm:$0xf] (!%p190_p9)  ;;  %vm225_vm1 = vcmask (!%p190_p9), 15360  }
   0xf   : > { %507 = vmatprep.subr.mxu1 (!%p190_p9), %v630_v1  ;;  %509 = vmatprep.mubr.msk.f32.mxu1 (!%p190_p9), %vm629_vm0, %v630_v1  ;;  %s633_s15 = smov (!%p190_p9), 126   ;;  %vm230_vm2 = vcmask (!%p190_p9), 113664   ;;  %vm234_vm3 = vcmask (!%p190_p9), 1043456   ;;  %vm634_vm4 = vmmov (!%p190_p9), 1   ;;  %v236_v13 = vld [vmem:[%s782_s1] sm:$0xf] (!%p190_p9) }
  0x10   : > { %562 = vset.pattern.permute.xlu1 (!%p190_p9), %v631_v3  ;;  %563 = vset.pattern.permute.xlu0 (!%p190_p9), %v631_v3  ;;  %vm514_vm5 = vmpackc.low (!%p190_p9), %vm234_vm3, %vm634_vm4  ;;  %vm243_vm6 = vcmask (!%p190_p9), 97280   ;;  %v321_v19 = vld [vmem:[%s784_s3] sm:$0xf] (!%p190_p9)  ;;  %vm328_vm7 = vcmask (!%p190_p9), 31744   ;;  %s213_s26 = sand.u32 (!%p190_p9), 1, %s618_s19   ;;  %vm406_vm8 = vcmask (!%p190_p9), 125952  }
  0x11   : > { %240 = vperm.xlu1 (!%p190_p9), %562, %v237_v2  }
  0x15   : > { %s217_s30 = scalar_select %p216_p10, %s687_s22, 1  ;;  %325 = vperm.xlu1 %562, %v322_v5  }
  0x17   : > { %s486_s6 = sshll.u32 %s217_s30, 2  ;;  %s485_s30 = sshll.u32 %s213_s26, 2 }
  0x18   : > { %s219_s11 = scalar_lea.vmem %s781_s0, %s486_s6  ;;  %s492_s6 = sshll.u32 %s687_s22, 6 }
  0x19   : > { %v220_v4 = vld [vmem:[%s219_s11] sm:$0xf]  ;;  %s215_s7 = scalar_lea.vmem [#allocation2], %s485_s30  ;;  %s739_s11 = scalar_lea.hbm %s786_s5, %s492_s6 }
  0x1a   : > { %222 = vrot.lane.b32.xlu0 %v220_v4, %s632_s12  ;;  %v232_v7 = vrot.slane %v220_v4, 4  ;;  %s422_s8 = sshll.u32 %s215_s7, 4  ;;  %s409_s12 = scalar_lea.sflag [#allocation3], %s213_s26  ;;  %s741_s8 = int_to_ptr.vmem [resolvable:$true] %s422_s8 }
  0x1b   : > { %s564_s13 = scalar_lea.vmem %s741_s8, 64  ;;  %s635_s22 = smov [#allocation2]  }
  0x1c   : > { %p565_p11 = scmp.ne.s32.totalorder %s741_s8, %s564_s13  ;;  %s568_s14 = sshll.u32 %s635_s22, 4  ;;  %s569_s14 = int_to_ptr.vmem [resolvable:$false] %s568_s14 }
  0x1d   : > { %p571_p0 = scmp.lt.s32.totalorder %s741_s8, %s569_s14 }
  0x1e   : > { %227 = vrot.lane.b32.xlu0 %v220_v4, %s633_s15  ;;  %p566_p12 = pnand %p565_p11, %p704_p5  ;;  %s570_s15 = scalar_lea.vmem %s569_s14, 128 }
  0x1f   : > { %p572_p1 = scmp.lt.s32.totalorder %s570_s15, %s564_s13 }
  0x20   : > { %p567_p13 = pneg %p566_p12 }
  0x21   : > { %p573_p2 = por %p572_p1, %p571_p0 }
  0x23   : > { %p574_p3 = pnand %p573_p2, %p567_p13 }
  0x8c   : > { %v223_v6 = vpop.permute.xlu0 %222 }
  0x8d   : > { %v226_v8 = vsel %vm225_vm1, 0.0, %v223_v6 }
  0x8e   : > { %v235_v11 = vsel %vm234_vm3, %v226_v8, %v232_v7 }
  0x90   : > { %v228_v9 = vpop.permute.xlu0 %227  ;;  %v241_v14 = vpop.permute.xlu1 %240 }
  0x91   : > { %v231_v10 = vsel %vm230_vm2, %v228_v9, 0.0 }
  0x92   : > { %v513_v12 = vpack.c.bf16 %v231_v10, %v235_v11 }
  0x94   : > { %515 = vmatpush3.bf16.msk.msra.mxu0 %vm514_vm5, %v513_v12  ;;  %v326_v20 = vpop.permute.xlu1 %325 }
  0x97   : > { %505 = vmatmul.mubr.msk.f32.vlgmr.msra.gmra.mrb[0].mxu0 %vm243_vm6, %v236_v13 }
 0x16a   : > { %v316_v15 = vpop.f32.mrb[0].mxu0 }
 0x16b   : > { %v317_v16 = vadd.f32 %v316_v15, %v241_v14  ;;  %v506_v17 = vpop.f32.mrb[1].mxu0 }
 0x16d   : > { %v320_v18 = vmax.f32 %v317_v16, 0.0 }
 0x16f   : > { %508 = vmatpush3.msk.msra.mxu1 %vm234_vm3, %v320_v18 }
 0x170   : > { %510 = vmatmul.mubr.msk.f32.vlgmr.msra.gmra.mrb[0].mxu1 %vm328_vm7, %v321_v19 }
 0x243   : > { %v401_v21 = vpop.f32.mrb[0].mxu1 }
 0x244   : > { %v402_v22 = vadd.f32 %v401_v21, %v326_v20  ;;  %v511_v23 = vpop.f32.mrb[1].mxu1 }
 0x246   : > { %v405_v24 = vadd.f32 %v402_v22, %v220_v4 }
 0x248   : > { %407 = vst.msk [vmem:[%s215_s7] sm:$0xf] %vm406_vm8, %v405_v24 }
 0x249   : > { %577 = shalt.err (!%p574_p3)
}
 0x24a   : > { %s578_s16 = scalar_lea.hbm %s739_s11, 64  ;;  %s582_s25 = scalar_lea.hbm %s786_s5, 128 }
 0x24b   : > { %p579_p4 = scmp.ne.s32.totalorder %s739_s11, %s578_s16  ;;  %p583_p9 = scmp.lt.u32.totalorder %s739_s11, %s786_s5 }
 0x24c   : > { %p584_p10 = scmp.lt.u32.totalorder %s582_s25, %s578_s16  ;;  %p586_p12 = scmp.lt.u32.totalorder %s578_s16, %s739_s11 }
 0x24d   : > { %p580_p7 = pnand %p579_p4, %p704_p5 }
 0x24e   : > { %p585_p11 = por %p584_p10, %p583_p9 }
 0x24f   : > { %p581_p8 = pneg %p580_p7 }
 0x250   : > { %p587_p13 = por %p586_p12, %p585_p11 }
 0x252   : > { %p588_p0 = pnand %p587_p13, %p581_p8 }
 0x254   : > { %591 = shalt.err (!%p588_p0)
}
 0x255   : > { %516 = dma.vmem_to_hbm [thread:$0]  (%p704_p5), %s741_s8, 64, %s739_s11, %s409_s12  }
 0x256 PF: > { %p522_p1 = scmp.ge.s32.totalorder %s626_s21, 2  ;;  %s434_s6 = sand.u32 1, %s614_s18  }
 0x257   : > { %s435_s7 = scalar_lea.sflag [#allocation3], %s434_s6 }
 0x258   : > { %p519_p2 = pnand %p522_p1, %p708_p6 }
 0x25a   : > { %609 = dma.done.wait (!%p519_p2), %s435_s7, 64  }
 0x25b   : > { %611 = vsyncadd (!%p519_p2), %s435_s7, 4294967232  ;;  %p15_p3 = scmp.ge.s32.totalorder %s691_s24, 4   ;;  %s789_s18 = smov %s618_s19 }
 0x25c   : > { %s790_s19 = smov %s622_s20  ;;  %s791_s20 = smov %s702_s27 }
 0x25d   : > { %s792_s21 = smov %s691_s24  ;;  %17 = sbr.rel (!%p15_p3) target bundleno = 3 (0x3), region = 75 }
 0x264   :  { %440 = vsyncpa [#allocation3], 1 }
 0x265   :  { %442 = vsyncpa [#allocation3 + $0x1], 1 }

</bundles_post_ra>
